<compile_context>
chip_gen: v6e
topology: v6e:2x2x1
jax: 0.10.0
libtpu: 0.0.40
codegen_flags: <defaults>
</compile_context>

<pallas_src>
import functools

import jax
import jax.numpy as jnp
from jax.experimental import pallas as pl
from jax.experimental.pallas import tpu as pltpu


def _round_up(n: int, m: int) -> int:
    return ((n + m - 1) // m) * m


def dqn_kernel(x_ref, w1_ref, b1_ref, w2_ref, b2_ref, out_ref):
    # hidden = tanh(x @ W1 + b1), all fp32 (matches the fp32 PyTorch model).
    h = jnp.dot(x_ref[...], w1_ref[...], preferred_element_type=jnp.float32)
    h = jnp.tanh(h + b1_ref[...])
    # q = hidden @ W2 + b2; output block is the exact (tb, action_dim) tile.
    q = jnp.dot(h, w2_ref[...], preferred_element_type=jnp.float32)
    out_ref[...] = (q + b2_ref[...]).astype(out_ref.dtype)


@functools.partial(jax.jit, static_argnames=("block_batch", "use_pallas"))
def dqn_forward(x, w1, b1, w2, b2, *, block_batch: int = 4096, use_pallas=None):
    """q = tanh(x @ w1 + b1) @ w2 + b2.

    x: (batch, state_dim) fp32; w1: (state_dim, hidden); b1: (1, hidden) or (hidden,)
    w2: (hidden, action_dim); b2: (1, action_dim) or (action_dim,)
    Returns (batch, action_dim) fp32.
    """
    batch, state_dim = x.shape
    hidden = w1.shape[1]
    action_dim = w2.shape[1]

    b1_f = jnp.reshape(b1, (1, hidden)).astype(jnp.float32)
    b2_f = jnp.reshape(b2, (1, action_dim)).astype(jnp.float32)

    if use_pallas is None:
        # Tiny RL batches: a fused XLA matmul chain beats kernel launch overhead.
        use_pallas = batch >= 256

    if not use_pallas:
        x32 = x.astype(jnp.float32)
        return (jnp.tanh(x32 @ w1.astype(jnp.float32) + b1_f)
                @ w2.astype(jnp.float32) + b2_f)

    # Pad hidden to 128 lanes once (free: a (tb, 32) tile already occupies full
    # 128-lane vregs; padded lanes are exactly zero and W2's padded rows are
    # zero, so they contribute nothing).
    h_pad = _round_up(hidden, 128)
    w1_p = jnp.zeros((state_dim, h_pad), jnp.float32).at[:, :hidden].set(
        w1.astype(jnp.float32))
    b1_p = jnp.zeros((1, h_pad), jnp.float32).at[:, :hidden].set(b1_f)
    w2_p = jnp.zeros((h_pad, action_dim), jnp.float32).at[:hidden, :].set(
        w2.astype(jnp.float32))

    # Batch tile: large (amortize per-step overhead), multiple of 8 sublanes.
    tb = min(block_batch, _round_up(batch, 8))
    if batch >= 1024:
        # Ensure >= 2 tiles so v7x's two TensorCores both get work.
        tb = min(tb, _round_up((batch + 1) // 2, 8))
    tb = max(tb, 8)
    n_tiles = pl.cdiv(batch, tb)

    cost = pl.CostEstimate(
        flops=2 * batch * (state_dim * h_pad + h_pad * action_dim),
        transcendentals=batch * h_pad,
        bytes_accessed=(batch * state_dim * 4            # x (fp32 in)
                        + w1_p.size * 4 + b1_p.size * 4  # resident weights
                        + w2_p.size * 4 + b2_f.size * 4
                        + batch * action_dim * 4),       # unpadded fp32 out
    )

    return pl.pallas_call(
        dqn_kernel,
        out_shape=jax.ShapeDtypeStruct((batch, action_dim), jnp.float32),
        grid=(n_tiles,),
        in_specs=[
            pl.BlockSpec((tb, state_dim), lambda i: (i, 0)),      # x: batch-tiled
            pl.BlockSpec((state_dim, h_pad), lambda i: (0, 0)),   # W1: resident
            pl.BlockSpec((1, h_pad), lambda i: (0, 0)),           # b1: resident
            pl.BlockSpec((h_pad, action_dim), lambda i: (0, 0)),  # W2: resident
            pl.BlockSpec((1, action_dim), lambda i: (0, 0)),      # b2: resident
        ],
        out_specs=pl.BlockSpec((tb, action_dim), lambda i: (i, 0)),
        compiler_params=pltpu.CompilerParams(
            dimension_semantics=("parallel",),  # shard batch tiles across TCs (v7x)
        ),
        cost_estimate=cost,
    )(x.astype(jnp.float32), w1_p, b1_p, w2_p, b2_f)


def init_dqn_params(key, state_dim, action_dim, hidden_size=32):
    """Deterministic synthetic init (PyTorch-Linear-style uniform bounds)."""
    k1, k2, k3, k4 = jax.random.split(key, 4)
    bound1 = 1.0 / jnp.sqrt(state_dim)
    bound2 = 1.0 / jnp.sqrt(hidden_size)
    w1 = jax.random.uniform(k1, (state_dim, hidden_size), jnp.float32, -bound1, bound1)
    b1 = jax.random.uniform(k2, (1, hidden_size), jnp.float32, -bound1, bound1)
    w2 = jax.random.uniform(k3, (hidden_size, action_dim), jnp.float32, -bound2, bound2)
    b2 = jax.random.uniform(k4, (1, action_dim), jnp.float32, -bound2, bound2)
    return w1, b1, w2, b2


if __name__ == "__main__":
    state_dim, action_dim, hidden_size = 16, 4, 32

    key = jax.random.PRNGKey(0)
    kx1, kx2, kp = jax.random.split(key, 3)
    w1, b1, w2, b2 = init_dqn_params(kp, state_dim, action_dim, hidden_size)

    def ref(xv):
        h = jnp.tanh(jnp.dot(xv, w1, precision=jax.lax.Precision.HIGHEST) + b1)
        return jnp.dot(h, w2, precision=jax.lax.Precision.HIGHEST) + b2

    # Small RL-style batch, forced through the Pallas kernel.
    x_small = jax.random.normal(kx1, (8, state_dim), dtype=jnp.float32)
    q_small = dqn_forward(x_small, w1, b1, w2, b2, use_pallas=True)
    jax.block_until_ready(q_small)
    assert q_small.shape == (8, action_dim)
    assert jnp.allclose(q_small, ref(x_small), atol=2e-2, rtol=2e-2)

    # Larger, non-multiple-of-8 batch: exercises the batch tiling and the
    # masked ragged last tile.
    x_big = jax.random.normal(kx2, (300, state_dim), dtype=jnp.float32)
    q_big = dqn_forward(x_big, w1, b1, w2, b2, use_pallas=True)
    jax.block_until_ready(q_big)
    assert q_big.shape == (300, action_dim)
    assert jnp.allclose(q_big, ref(x_big), atol=2e-2, rtol=2e-2)

    # Auto path: tiny batch takes the fused-XLA fallback.
    q_auto = dqn_forward(x_small, w1, b1, w2, b2)
    jax.block_until_ready(q_auto)
    assert q_auto.shape == (8, action_dim)
    assert jnp.allclose(q_auto, ref(x_small), atol=2e-2, rtol=2e-2)

    print("KERNEL_OK")
</pallas_src>

<mosaic_0001>
module attributes {stable_mosaic.version = 11 : i64} {
  func.func @dqn_kernel(%arg0: i32, %arg1: memref<8x16xf32, #tpu.memory_space<vmem>>, %arg2: memref<16x128xf32, #tpu.memory_space<vmem>>, %arg3: memref<1x128xf32, #tpu.memory_space<vmem>>, %arg4: memref<128x4xf32, #tpu.memory_space<vmem>>, %arg5: memref<1x4xf32, #tpu.memory_space<vmem>>, %arg6: memref<8x4xf32, #tpu.memory_space<vmem>>) attributes {dimension_semantics = [#tpu.dimension_semantics<parallel>], iteration_bounds = array<i64: 1>, scalar_prefetch = 0 : i64, scratch_operands = 0 : i64, tpu.core_type = #tpu.core_type<tc>, window_params = [{transform_indices = @transform_0, window_bounds = array<i64: 8, 16>}, {pipeline_mode = #tpu.pipeline_mode<synchronous>, transform_indices = @transform_1, window_bounds = array<i64: 16, 128>}, {pipeline_mode = #tpu.pipeline_mode<synchronous>, transform_indices = @transform_2, window_bounds = array<i64: 1, 128>}, {pipeline_mode = #tpu.pipeline_mode<synchronous>, transform_indices = @transform_3, window_bounds = array<i64: 128, 4>}, {pipeline_mode = #tpu.pipeline_mode<synchronous>, transform_indices = @transform_4, window_bounds = array<i64: 1, 4>}, {transform_indices = @transform_5, window_bounds = array<i64: 8, 4>}]} {
    %c0 = arith.constant 0 : index
    %c0_0 = arith.constant 0 : index
    %0 = vector.load %arg1[%c0, %c0_0] : memref<8x16xf32, #tpu.memory_space<vmem>>, vector<8x16xf32>
    %c0_1 = arith.constant 0 : index
    %c0_2 = arith.constant 0 : index
    %1 = vector.load %arg2[%c0_1, %c0_2] : memref<16x128xf32, #tpu.memory_space<vmem>>, vector<16x128xf32>
    %cst = arith.constant dense<0.000000e+00> : vector<8x128xf32>
    %2 = tpu.matmul %0, %1, %cst {dimension_numbers = #tpu.dot_dimension_numbers<[1], [0], [0], [1], [0, 0, 1, 1], [], []>} : vector<8x16xf32>, vector<16x128xf32>, vector<8x128xf32> -> vector<8x128xf32>
    %c0_3 = arith.constant 0 : index
    %c0_4 = arith.constant 0 : index
    %3 = vector.load %arg3[%c0_3, %c0_4] : memref<1x128xf32, #tpu.memory_space<vmem>>, vector<1x128xf32>
    %4 = vector.broadcast %3 : vector<1x128xf32> to vector<8x128xf32>
    %5 = arith.addf %2, %4 : vector<8x128xf32>
    %6 = math.tanh %5 : vector<8x128xf32>
    %c0_5 = arith.constant 0 : index
    %c0_6 = arith.constant 0 : index
    %7 = vector.load %arg4[%c0_5, %c0_6] : memref<128x4xf32, #tpu.memory_space<vmem>>, vector<128x4xf32>
    %cst_7 = arith.constant dense<0.000000e+00> : vector<8x4xf32>
    %8 = tpu.matmul %6, %7, %cst_7 {dimension_numbers = #tpu.dot_dimension_numbers<[1], [0], [0], [1], [0, 0, 1, 1], [], []>} : vector<8x128xf32>, vector<128x4xf32>, vector<8x4xf32> -> vector<8x4xf32>
    %c0_8 = arith.constant 0 : index
    %c0_9 = arith.constant 0 : index
    %9 = vector.load %arg5[%c0_8, %c0_9] : memref<1x4xf32, #tpu.memory_space<vmem>>, vector<1x4xf32>
    %10 = vector.broadcast %9 : vector<1x4xf32> to vector<8x4xf32>
    %11 = arith.addf %8, %10 : vector<8x4xf32>
    %c0_10 = arith.constant 0 : index
    %c0_11 = arith.constant 0 : index
    %12 = vector.load %arg6[%c0_10, %c0_11] : memref<8x4xf32, #tpu.memory_space<vmem>>, vector<8x4xf32>
    tpu.vector_store %arg6[%c0_10, %c0_11], %11 {strides = array<i32>} : memref<8x4xf32, #tpu.memory_space<vmem>>, vector<8x4xf32>,
    return
  }
  func.func @transform_0(%arg0: i32) -> (i32, i32) {
    %c0_i32 = arith.constant 0 : i32
    %c0_i32_0 = arith.constant 0 : i32
    return %arg0, %c0_i32 : i32, i32
  }
  func.func @transform_1(%arg0: i32) -> (i32, i32) {
    %c0_i32 = arith.constant 0 : i32
    %c0_i32_0 = arith.constant 0 : i32
    %c0_i32_1 = arith.constant 0 : i32
    return %c0_i32, %c0_i32_0 : i32, i32
  }
  func.func @transform_2(%arg0: i32) -> (i32, i32) {
    %c0_i32 = arith.constant 0 : i32
    %c0_i32_0 = arith.constant 0 : i32
    %c0_i32_1 = arith.constant 0 : i32
    return %c0_i32, %c0_i32_0 : i32, i32
  }
  func.func @transform_3(%arg0: i32) -> (i32, i32) {
    %c0_i32 = arith.constant 0 : i32
    %c0_i32_0 = arith.constant 0 : i32
    %c0_i32_1 = arith.constant 0 : i32
    return %c0_i32, %c0_i32_0 : i32, i32
  }
  func.func @transform_4(%arg0: i32) -> (i32, i32) {
    %c0_i32 = arith.constant 0 : i32
    %c0_i32_0 = arith.constant 0 : i32
    %c0_i32_1 = arith.constant 0 : i32
    return %c0_i32, %c0_i32_0 : i32, i32
  }
  func.func @transform_5(%arg0: i32) -> (i32, i32) {
    %c0_i32 = arith.constant 0 : i32
    %c0_i32_0 = arith.constant 0 : i32
    return %arg0, %c0_i32 : i32, i32
  }
}

</mosaic_0001>

<bundles_post_ra>
// kernel: dqn_forward.1
= control target key start
LH: loop header
LB: loop body
LE: loop exit
PB: predicated region body
PF: predicated region fallthrough
CT: control target
= control target key end

     0   :  { %v273_v0 = vmov 0.0   ;;  %vm274_vm0 = vmmov 0   ;;  %vm30_vm1 = vcmask 130048   ;;  %vm198_vm2 = vcmask 31744   ;;  %s373_s1 = inlined_call_operand.vmem [shape: f32[16,128], index: 1, kind: input, shape index: {}]   ;;  %s374_s0 = inlined_call_operand.vmem [shape: f32[8,16], index: 0, kind: input, shape index: {}]   ;;  %s375_s3 = inlined_call_operand.vmem [shape: f32[128,4], index: 3, kind: input, shape index: {}]   ;;  %s376_s2 = inlined_call_operand.vmem [shape: f32[1,128], index: 2, kind: input, shape index: {}]   ;;  %s377_s4 = inlined_call_operand.vmem [shape: f32[1,4], index: 4, kind: input, shape index: {}]   ;;  %s378_s5 = inlined_call_operand.vmem [shape: f32[8,4], index: 5, kind: output, shape index: {}]  }
   0x1   :  { %227 = vmatprep.subr.mxu0 %v273_v0  ;;  %v22_v1 = vld [vmem:[%s373_s1 + $0x8] sm:$0xff]  ;;  %v21_v2 = vld [vmem:[%s373_s1] sm:$0xff]  ;;  %231 = vmatprep.mubr.msk.f32.mxu0 %vm274_vm0, %v273_v0  ;;  %v120_v4 = vld [vmem:[%s375_s3 + $0x78] sm:$0xff] }
   0x2   :  { %228 = vmatpush3.msra.mxu0 %v22_v1  ;;  %v20_v3 = vld [vmem:[%s374_s0] sm:$0xff]  ;;  %234 = vmatprep.subr.mxu1 %v273_v0  ;;  %v119_v5 = vld [vmem:[%s375_s3 + $0x70] sm:$0xff]  ;;  %v118_v6 = vld [vmem:[%s375_s3 + $0x68] sm:$0xff] }
   0x3   :  { %229 = vmatprep.subr.mxu0 %v273_v0  ;;  %235 = vmatpush3.msra.mxu1 %v120_v4  ;;  %v117_v7 = vld [vmem:[%s375_s3 + $0x60] sm:$0xff]  ;;  %v116_v8 = vld [vmem:[%s375_s3 + $0x58] sm:$0xff]  ;;  %v115_v9 = vld [vmem:[%s375_s3 + $0x50] sm:$0xff] }
   0x4   :  { %230 = vmatpush3.msra.mxu0 %v21_v2  ;;  %236 = vmatprep.subr.mxu1 %v273_v0  ;;  %v114_v10 = vld [vmem:[%s375_s3 + $0x48] sm:$0xff]  ;;  %v113_v11 = vld [vmem:[%s375_s3 + $0x40] sm:$0xff]  ;;  %v112_v12 = vld [vmem:[%s375_s3 + $0x38] sm:$0xff] }
   0x5   :  { %232 = vmatmul.mubr.msk.f32.vlgmr.msra.gmra.mxu0 %vm30_vm1, %v20_v3  ;;  %237 = vmatpush3.msra.mxu1 %v119_v5  ;;  %v111_v13 = vld [vmem:[%s375_s3 + $0x30] sm:$0xff]  ;;  %v110_v14 = vld [vmem:[%s375_s3 + $0x28] sm:$0xff]  ;;  %v109_v15 = vld [vmem:[%s375_s3 + $0x20] sm:$0xff] }
   0x6   :  { %238 = vmatprep.subr.mxu1 %v273_v0  ;;  %266 = vmatprep.mubr.msk.f32.mxu1 %vm274_vm0, %v273_v0  ;;  %v108_v16 = vld [vmem:[%s375_s3 + $0x18] sm:$0xff]  ;;  %v107_v17 = vld [vmem:[%s375_s3 + $0x10] sm:$0xff]  ;;  %v106_v18 = vld [vmem:[%s375_s3 + $0x8] sm:$0xff] }
   0x7   :  { %239 = vmatpush3.msra.mxu1 %v118_v6  ;;  %v105_v19 = vld [vmem:[%s375_s3] sm:$0xff] }
   0x8   :  { %240 = vmatprep.subr.mxu1 %v273_v0  ;;  %v204_v20 = vld [vmem:[%s376_s2] ss:$0 sm:$0xff] }
   0x9   :  { %241 = vmatpush3.msra.mxu1 %v117_v7  ;;  %v206_v25 = vld [vmem:[%s377_s4] ss:$0 sm:$0xff] }
   0xa   :  { %242 = vmatprep.subr.mxu1 %v273_v0 }
   0xb   :  { %243 = vmatpush3.msra.mxu1 %v116_v8 }
   0xc   :  { %244 = vmatprep.subr.mxu1 %v273_v0 }
   0xd   :  { %245 = vmatpush3.msra.mxu1 %v115_v9 }
   0xe   :  { %246 = vmatprep.subr.mxu1 %v273_v0 }
   0xf   :  { %247 = vmatpush3.msra.mxu1 %v114_v10 }
  0x10   :  { %248 = vmatprep.subr.mxu1 %v273_v0 }
  0x11   :  { %249 = vmatpush3.msra.mxu1 %v113_v11 }
  0x12   :  { %250 = vmatprep.subr.mxu1 %v273_v0 }
  0x13   :  { %251 = vmatpush3.msra.mxu1 %v112_v12 }
  0x14   :  { %252 = vmatprep.subr.mxu1 %v273_v0 }
  0x15   :  { %253 = vmatpush3.msra.mxu1 %v111_v13 }
  0x16   :  { %254 = vmatprep.subr.mxu1 %v273_v0 }
  0x17   :  { %255 = vmatpush3.msra.mxu1 %v110_v14 }
  0x18   :  { %256 = vmatprep.subr.mxu1 %v273_v0 }
  0x19   :  { %257 = vmatpush3.msra.mxu1 %v109_v15 }
  0x1a   :  { %258 = vmatprep.subr.mxu1 %v273_v0 }
  0x1b   :  { %259 = vmatpush3.msra.mxu1 %v108_v16 }
  0x1c   :  { %260 = vmatprep.subr.mxu1 %v273_v0 }
  0x1d   :  { %261 = vmatpush3.msra.mxu1 %v107_v17 }
  0x1e   :  { %262 = vmatprep.subr.mxu1 %v273_v0 }
  0x1f   :  { %263 = vmatpush3.msra.mxu1 %v106_v18 }
  0x20   :  { %264 = vmatprep.subr.mxu1 %v273_v0 }
  0x21   :  { %265 = vmatpush3.msra.mxu1 %v105_v19 }
  0xc5   :  { %v100_v21 = vpop.f32.mrf.mxu0 }
  0xc6   :  { %v101_v22 = vadd.f32 %v204_v20, %v100_v21 }
  0xc7   :  { %v233_v23 = vpop.f32.mrf.mxu0 }
  0xc8   :  { %271 = vtanh.f32 %v101_v22 }
  0xd5   :  { %v272_v24 = vpop.eup %271 }
  0xd6   :  { %267 = vmatmul.mubr.f32.vlgmr.msra.gmra.mxu1 %v272_v24 }
 0x196   :  { %v194_v26 = vpop.f32.mrf.mxu1 }
 0x197   :  { %v195_v27 = vadd.f32 %v206_v25, %v194_v26 }
 0x198   :  { %v268_v28 = vpop.f32.mrf.mxu1 }
 0x199   :  { %199 = vst.msk [vmem:[%s378_s5] sm:$0xff] %vm198_vm2, %v195_v27 }

</bundles_post_ra>
